<compile_context>
chip_gen: v7x
topology: tpu7x:2x2x1
jax: 0.10.0
libtpu: 0.0.40
codegen_flags: <defaults>
</compile_context>

<pallas_src>
import functools

import jax
import jax.numpy as jnp
from jax.experimental import pallas as pl
from jax.experimental.pallas import tpu as pltpu


def patch_embed_kernel(x_ref, w_ref, b_ref, g_ref, beta_ref, o_ref, *, eps):
    # One MXU matmul over this tile of patches: (TM, K) @ (K, E), f32 accumulation.
    y = jnp.dot(x_ref[...], w_ref[...], preferred_element_type=jnp.float32)
    y = y + b_ref[...]                       # bias in f32

    # Fused LayerNorm over the embedding (lane) dimension, all f32.
    mu = jnp.mean(y, axis=-1, keepdims=True)
    yc = y - mu
    var = jnp.mean(yc * yc, axis=-1, keepdims=True)
    yn = yc * jax.lax.rsqrt(var + eps)

    o_ref[...] = (yn * g_ref[...] + beta_ref[...]).astype(o_ref.dtype)


def _choose_tm(m, cap):
    """M-tile: multiple of 8, <= cap, preferring >= 2 grid steps (v7x megacore)
    and an exact divisor of m (avoids any padded copy of the patch matrix)."""
    if m <= 8:
        return m                                  # block == full dim is legal
    cap = max(8, min(cap, m))
    if m >= 16:                                   # leave room for >= 2 grid steps
        cap = min(cap, max(8, (m // 2) // 8 * 8))
    cap = max(8, (cap // 8) * 8)
    for t in range(cap, 7, -8):                   # largest 8-aligned divisor of m
        if m % t == 0:
            return t
    return cap                                    # ragged last block; Pallas masks OOB


def patch_embed_forward(x_nchw, params, patch_size, *, eps=1e-5,
                        compute_dtype=jnp.bfloat16, out_dtype=jnp.bfloat16,
                        vmem_budget_bytes=24 * 1024 * 1024):
    """x_nchw: (B, C, H, W) PyTorch layout.  Returns ((B, L, E), (nH, nW))."""
    B, C, H, W = x_nchw.shape
    ph, pw = patch_size
    nH, nW = H // ph, W // pw
    K = C * ph * pw
    E = params["w"].shape[1]
    M = B * nH * nW

    in_bytes = jnp.dtype(compute_dtype).itemsize
    out_bytes = jnp.dtype(out_dtype).itemsize

    # Wrapper-side patchify (pure layout plumbing).  Cast to bf16 FIRST so the
    # transpose copy moves half the bytes and the MXU gets its native bf16 input.
    xc = x_nchw.astype(compute_dtype)
    patches = (xc.reshape(B, C, nH, ph, nW, pw)
                 .transpose(0, 2, 4, 1, 3, 5)
                 .reshape(M, K))
    w = params["w"].astype(compute_dtype)         # (K, E)

    # Pad the contraction dim to a lane-full / MXU-friendly multiple of 128
    # (zeros are mathematically free; only fires for small-K configs like the demo).
    K_pad = ((K + 127) // 128) * 128
    if K_pad != K:
        patches = jnp.pad(patches, ((0, 0), (0, K_pad - K)))
        w = jnp.pad(w, ((0, K_pad - K), (0, 0)))

    # Size the M tile from the VMEM budget: double-buffered in/out tiles +
    # double-buffered weight + f32 temps.
    # TODO(synk): on v7x, single-buffer the constant weight block
    # (pipeline_mode=pl.Buffered(1)) to halve its VMEM share for very large K*E.
    fixed = 2 * K_pad * E * in_bytes + 6 * E * 4
    per_row = 2 * K_pad * in_bytes + 2 * E * out_bytes + 8 * E
    cap = max(8, min(2048, (vmem_budget_bytes - fixed) // per_row))
    TM = _choose_tm(M, cap)
    num_tiles = pl.cdiv(M, TM)

    vmem_limit = int(min(64 * 1024 * 1024,
                         max(32 * 1024 * 1024, 2 * (fixed + TM * per_row))))

    grid_spec = pltpu.PrefetchScalarGridSpec(
        num_scalar_prefetch=0,
        grid=(num_tiles,),
        in_specs=[
            pl.BlockSpec((TM, K_pad), lambda i: (i, 0)),   # patches (bf16)
            pl.BlockSpec((K_pad, E), lambda i: (0, 0)),    # projection weight (bf16)
            pl.BlockSpec((1, E), lambda i: (0, 0)),        # projection bias (f32)
            pl.BlockSpec((1, E), lambda i: (0, 0)),        # LayerNorm gamma (f32)
            pl.BlockSpec((1, E), lambda i: (0, 0)),        # LayerNorm beta  (f32)
        ],
        out_specs=pl.BlockSpec((TM, E), lambda i: (i, 0)),
    )

    out = pl.pallas_call(
        functools.partial(patch_embed_kernel, eps=eps),
        out_shape=jax.ShapeDtypeStruct((M, E), out_dtype),
        grid_spec=grid_spec,
        compiler_params=pltpu.CompilerParams(
            dimension_semantics=("parallel",),
            vmem_limit_bytes=vmem_limit),
    )(patches, w, params["b"], params["gamma"], params["beta"])

    return out.reshape(B, nH * nW, E), (nH, nW)


def init_params(key, in_chans, patch_size, embed_dim):
    ph, pw = patch_size
    K = in_chans * ph * pw
    kw, kb, kg, kbeta = jax.random.split(key, 4)
    return dict(
        # weight stored in matmul layout (patch_dim, embed_dim), patch_dim
        # flattened in (C, ph, pw) order to match the wrapper patchify.
        w=0.1 * jax.random.normal(kw, (K, embed_dim), jnp.float32),
        b=0.1 * jax.random.normal(kb, (1, embed_dim), jnp.float32),
        gamma=1.0 + 0.1 * jax.random.normal(kg, (1, embed_dim), jnp.float32),
        beta=0.1 * jax.random.normal(kbeta, (1, embed_dim), jnp.float32),
    )


def patch_embed_ref(x_nchw, params, patch_size, eps=1e-5,
                    compute_dtype=jnp.bfloat16):
    """Pure-JAX reference matching the PyTorch module (Conv2d + flatten + LayerNorm).
    Uses the same bf16-rounded inputs with f32 accumulation so the comparison is tight."""
    B, C, H, W = x_nchw.shape
    ph, pw = patch_size
    E = params["w"].shape[1]
    w_conv = params["w"].T.reshape(E, C, ph, pw)          # (O, I, kh, kw)
    y = jax.lax.conv_general_dilated(
        x_nchw.astype(compute_dtype), w_conv.astype(compute_dtype),
        (ph, pw), "VALID",
        dimension_numbers=("NCHW", "OIHW", "NCHW"),
        preferred_element_type=jnp.float32)               # (B, E, nH, nW)
    y = y + params["b"].reshape(1, E, 1, 1)
    y = y.reshape(B, E, -1).transpose(0, 2, 1)            # (B, L, E)
    mu = y.mean(-1, keepdims=True)
    var = ((y - mu) ** 2).mean(-1, keepdims=True)
    yn = (y - mu) / jnp.sqrt(var + eps)
    return yn * params["gamma"].reshape(1, 1, E) + params["beta"].reshape(1, 1, E)


if __name__ == "__main__":
    B, C, H, W = 2, 4, 16, 16
    patch_size = (4, 4)
    embed_dim = 128

    key = jax.random.PRNGKey(0)
    kx, kp = jax.random.split(key)
    x_nchw = jax.random.normal(kx, (B, C, H, W), jnp.float32)   # PyTorch layout
    params = init_params(kp, C, patch_size, embed_dim)

    out, (nH, nW) = patch_embed_forward(x_nchw, params, patch_size)
    jax.block_until_ready(out)

    assert out.shape == (B, nH * nW, embed_dim)
    assert (nH, nW) == (H // patch_size[0], W // patch_size[1])

    ref = patch_embed_ref(x_nchw, params, patch_size)
    out_f32 = out.astype(jnp.float32)
    max_err = float(jnp.max(jnp.abs(out_f32 - ref)))
    # bf16 matmul inputs + bf16 output vs f32-epilogue reference.
    assert jnp.allclose(out_f32, ref, rtol=3e-2, atol=3e-2), max_err

    print("KERNEL_OK")
</pallas_src>

<mosaic_0001>
module attributes {stable_mosaic.version = 11 : i64} {
  func.func @patch_embed_kernel(%arg0: i32, %arg1: memref<16x128xbf16, #tpu.memory_space<vmem>>, %arg2: memref<128x128xbf16, #tpu.memory_space<vmem>>, %arg3: memref<1x128xf32, #tpu.memory_space<vmem>>, %arg4: memref<1x128xf32, #tpu.memory_space<vmem>>, %arg5: memref<1x128xf32, #tpu.memory_space<vmem>>, %arg6: memref<16x128xbf16, #tpu.memory_space<vmem>>) attributes {dimension_semantics = [#tpu.dimension_semantics<parallel>], iteration_bounds = array<i64: 2>, scalar_prefetch = 0 : i64, scratch_operands = 0 : i64, tpu.core_type = #tpu.core_type<tc>, window_params = [{transform_indices = @transform_0, window_bounds = array<i64: 16, 128>}, {pipeline_mode = #tpu.pipeline_mode<synchronous>, transform_indices = @transform_1, window_bounds = array<i64: 128, 128>}, {pipeline_mode = #tpu.pipeline_mode<synchronous>, transform_indices = @transform_2, window_bounds = array<i64: 1, 128>}, {pipeline_mode = #tpu.pipeline_mode<synchronous>, transform_indices = @transform_3, window_bounds = array<i64: 1, 128>}, {pipeline_mode = #tpu.pipeline_mode<synchronous>, transform_indices = @transform_4, window_bounds = array<i64: 1, 128>}, {transform_indices = @transform_5, window_bounds = array<i64: 16, 128>}]} {
    %c0 = arith.constant 0 : index
    %c0_0 = arith.constant 0 : index
    %0 = vector.load %arg1[%c0, %c0_0] : memref<16x128xbf16, #tpu.memory_space<vmem>>, vector<16x128xbf16>
    %c0_1 = arith.constant 0 : index
    %c0_2 = arith.constant 0 : index
    %1 = vector.load %arg2[%c0_1, %c0_2] : memref<128x128xbf16, #tpu.memory_space<vmem>>, vector<128x128xbf16>
    %cst = arith.constant dense<0.000000e+00> : vector<16x128xf32>
    %2 = tpu.matmul %0, %1, %cst {dimension_numbers = #tpu.dot_dimension_numbers<[1], [0], [0], [1], [0, 0, 1, 1], [], []>} : vector<16x128xbf16>, vector<128x128xbf16>, vector<16x128xf32> -> vector<16x128xf32>
    %c0_3 = arith.constant 0 : index
    %c0_4 = arith.constant 0 : index
    %3 = vector.load %arg3[%c0_3, %c0_4] : memref<1x128xf32, #tpu.memory_space<vmem>>, vector<1x128xf32>
    %4 = vector.broadcast %3 : vector<1x128xf32> to vector<16x128xf32>
    %5 = arith.addf %2, %4 : vector<16x128xf32>
    %cst_5 = arith.constant dense<0.000000e+00> : vector<16xf32>
    %6 = vector.multi_reduction <add>, %5, %cst_5 [1] : vector<16x128xf32> to vector<16xf32>
    %7 = vector.shape_cast %6 : vector<16xf32> to vector<16x1xf32>
    %cst_6 = arith.constant 1.280000e+02 : f32
    %8 = vector.broadcast %cst_6 : f32 to vector<16x1xf32>
    %9 = arith.divf %7, %8 : vector<16x1xf32>
    %10 = vector.broadcast %9 : vector<16x1xf32> to vector<16x128xf32>
    %11 = arith.subf %5, %10 : vector<16x128xf32>
    %12 = arith.mulf %11, %11 : vector<16x128xf32>
    %cst_7 = arith.constant dense<0.000000e+00> : vector<16xf32>
    %13 = vector.multi_reduction <add>, %12, %cst_7 [1] : vector<16x128xf32> to vector<16xf32>
    %14 = vector.shape_cast %13 : vector<16xf32> to vector<16x1xf32>
    %cst_8 = arith.constant 1.280000e+02 : f32
    %15 = vector.broadcast %cst_8 : f32 to vector<16x1xf32>
    %16 = arith.divf %14, %15 : vector<16x1xf32>
    %cst_9 = arith.constant 9.99999974E-6 : f32
    %17 = vector.broadcast %cst_9 : f32 to vector<16x1xf32>
    %18 = arith.addf %16, %17 : vector<16x1xf32>
    %19 = math.rsqrt %18 : vector<16x1xf32>
    %20 = vector.broadcast %19 : vector<16x1xf32> to vector<16x128xf32>
    %21 = arith.mulf %11, %20 : vector<16x128xf32>
    %c0_10 = arith.constant 0 : index
    %c0_11 = arith.constant 0 : index
    %22 = vector.load %arg4[%c0_10, %c0_11] : memref<1x128xf32, #tpu.memory_space<vmem>>, vector<1x128xf32>
    %23 = vector.broadcast %22 : vector<1x128xf32> to vector<16x128xf32>
    %24 = arith.mulf %21, %23 : vector<16x128xf32>
    %c0_12 = arith.constant 0 : index
    %c0_13 = arith.constant 0 : index
    %25 = vector.load %arg5[%c0_12, %c0_13] : memref<1x128xf32, #tpu.memory_space<vmem>>, vector<1x128xf32>
    %26 = vector.broadcast %25 : vector<1x128xf32> to vector<16x128xf32>
    %27 = arith.addf %24, %26 : vector<16x128xf32>
    %28 = arith.truncf %27 : vector<16x128xf32> to vector<16x128xbf16>
    %c0_14 = arith.constant 0 : index
    %c0_15 = arith.constant 0 : index
    %29 = vector.load %arg6[%c0_14, %c0_15] : memref<16x128xbf16, #tpu.memory_space<vmem>>, vector<16x128xbf16>
    tpu.vector_store %arg6[%c0_14, %c0_15], %28 {strides = array<i32>} : memref<16x128xbf16, #tpu.memory_space<vmem>>, vector<16x128xbf16>,
    return
  }
  func.func @transform_0(%arg0: i32) -> (i32, i32) {
    %c0_i32 = arith.constant 0 : i32
    %c0_i32_0 = arith.constant 0 : i32
    return %arg0, %c0_i32 : i32, i32
  }
  func.func @transform_1(%arg0: i32) -> (i32, i32) {
    %c0_i32 = arith.constant 0 : i32
    %c0_i32_0 = arith.constant 0 : i32
    %c0_i32_1 = arith.constant 0 : i32
    return %c0_i32, %c0_i32_0 : i32, i32
  }
  func.func @transform_2(%arg0: i32) -> (i32, i32) {
    %c0_i32 = arith.constant 0 : i32
    %c0_i32_0 = arith.constant 0 : i32
    %c0_i32_1 = arith.constant 0 : i32
    return %c0_i32, %c0_i32_0 : i32, i32
  }
  func.func @transform_3(%arg0: i32) -> (i32, i32) {
    %c0_i32 = arith.constant 0 : i32
    %c0_i32_0 = arith.constant 0 : i32
    %c0_i32_1 = arith.constant 0 : i32
    return %c0_i32, %c0_i32_0 : i32, i32
  }
  func.func @transform_4(%arg0: i32) -> (i32, i32) {
    %c0_i32 = arith.constant 0 : i32
    %c0_i32_0 = arith.constant 0 : i32
    %c0_i32_1 = arith.constant 0 : i32
    return %c0_i32, %c0_i32_0 : i32, i32
  }
  func.func @transform_5(%arg0: i32) -> (i32, i32) {
    %c0_i32 = arith.constant 0 : i32
    %c0_i32_0 = arith.constant 0 : i32
    return %arg0, %c0_i32 : i32, i32
  }
}

</mosaic_0001>

<bundles_post_ra>
// kernel: tpu_custom_call.1
= control target key start
LH: loop header
LB: loop body
LE: loop exit
PB: predicated region body
PF: predicated region fallthrough
CT: control target
= control target key end

     0   :  { %10 = vsyncpa [#allocation3], 0  ;;  %s1065_s0 = inlined_call_operand.hbm [shape: bf16[32,128], index: 0, kind: input, shape index: {}]   ;;  %s1066_s1 = inlined_call_operand.hbm [shape: bf16[128,128], index: 1, kind: input, shape index: {}]   ;;  %s1067_s2 = inlined_call_operand.vmem [shape: f32[1,128], index: 2, kind: input, shape index: {}]   ;;  %s1068_s3 = inlined_call_operand.vmem [shape: f32[1,128], index: 3, kind: input, shape index: {}]   ;;  %s1069_s4 = inlined_call_operand.vmem [shape: f32[1,128], index: 4, kind: input, shape index: {}]   ;;  %s1070_s5 = inlined_call_operand.hbm [shape: bf16[32,128], index: 5, kind: output, shape index: {}]  }
   0x1   :  { %12 = vsyncpa [#allocation3 + $0x1], 0 }
   0x2   :  { %13 = vsyncpa [#allocation6], 0 }
   0x3   :  { %14 = vsyncpa [#allocation4], 0 }
   0x4   :  { %16 = vsyncpa [#allocation4 + $0x1], 0  ;;  %s842_s18 = smov 0   ;;  %s844_s19 = smov 0  }
   0x5   :  { %s846_s20 = smov 0   ;;  %s848_s21 = smov 0  }
   0x6 LB: > { %s863_s22 = sadd.s32 4294967295, %s801_s21   ;;  %s529_s23 = sadd.s32 4294967294, %s801_s21   ;;  %s801_s21 = sphi %s848_s21, %s1090_s21   ;;  %s797_s20 = sphi %s846_s20, %s1089_s20   ;;  %s793_s19 = sphi %s844_s19, %s1088_s19   ;;  %s789_s18 = sphi %s842_s18, %s1087_s18  }
   0x7   : > { %p42_p0 = scmp.ne.s32.totalorder %s793_s19, %s789_s18  ;;  %p1071_p1 = scmp.eq.s32.totalorder %s863_s22, 0 }
   0x8   : > { %p156_p3 = scmp.eq.s32.totalorder %s529_s23, 1  ;;  %p530_p5 = scmp.ge.s32.totalorder %s801_s21, 1 }
   0x9   : > { %p872_p4 = por %p1071_p1, %p42_p0  ;;  %p163_p7 = scmp.lt.s32.totalorder %s801_s21, 3 }
   0xa   : > { %p877_p6 = por %p156_p3, %p42_p0  ;;  %s803_s27 = smov [#allocation5]  }
   0xb   : > { %s1074_s24 = scalar_select %p872_p4, 1, 0 }
   0xc   : > { %s1075_s25 = scalar_select %p877_p6, 1, 0 }
   0xd   : > { %p882_p8 = pnand %p530_p5, %p163_p7  ;;  %s175_s28 = sshll.u32 %s803_s27, 4  ;;  %s886_s28 = int_to_ptr.vmem [resolvable:$true] %s175_s28 }
   0xe   : > { %s898_s30 = sadd.s32 1, %s801_s21   ;;  %s29_s6 = sadd.s32 1, %s797_s20 }
   0xf   : > { %s1076_s26 = scalar_select %p882_p8, 1, 0 }
  0x10   : > { %p605_p9 = pneg %p882_p8  ;;  %s26_s7 = ssub.s32 %s801_s21, %s898_s30 }
  0x11   : > { %s673_s10 = scalar_lea.hbm %s1066_s1, 1024 }
  0x12   : > { %p893_p11 = pnand %p605_p9, %p1071_p1  ;;  %p674_p12 = scmp.ne.s32.totalorder %s1066_s1, %s673_s10 }
  0x13   : > { %p680_p5 = scmp.lt.u32.totalorder %s673_s10, %s1066_s1 }
  0x14   : > { %p675_p13 = pneg %p893_p11 }
  0x16   : > { %p676_p0 = pnand %p675_p13, %p674_p12 }
  0x18   : > { %p677_p3 = pneg %p676_p0 }
  0x1a   : > { %p682_p7 = pnand %p680_p5, %p677_p3 }
  0x1c   : > { %685 = shalt.err (!%p682_p7)
}
  0x1d   : > { %s686_s15 = scalar_lea.vmem %s886_s28, 1024  ;;  %p694_p2 = scmp.lt.s32.totalorder %s886_s28, %s886_s28 }
  0x1e   : > { %p687_p9 = scmp.ne.s32.totalorder %s886_s28, %s686_s15  ;;  %p695_p6 = scmp.lt.s32.totalorder %s686_s15, %s686_s15 }
  0x20   : > { %p689_p10 = pnand %p687_p9, %p675_p13  ;;  %p696_p4 = por %p695_p6, %p694_p2 }
  0x22   : > { %p690_p1 = pneg %p689_p10 }
  0x24   : > { %p697_p8 = pnand %p696_p4, %p690_p1 }
  0x26   : > { %700 = shalt.err (!%p697_p8)
}
  0x27   : > { %s804_s16 = smov 64   ;;  %s805_s17 = smov 4  }
  0x28   : > { %608 = dma.hbm_to_vmem [thread:$0]  (!%p893_p11), %s1066_s1, 1024, %s886_s28, [#allocation6], %s804_s16, %s804_s16, %s805_s17  }
  0x29   : > { %p27_p1 = scmp.eq.s32.totalorder %s26_s7, 0  ;;  %p36_p2 = scmp.ne.s32.totalorder %s797_s20, %s793_s19 }
  0x2a   : > { %p37_p4 = scmp.eq.s32.totalorder %s801_s21, 0  ;;  %p618_p6 = scmp.lt.s32.totalorder %s801_s21, 2 }
  0x2b   : > { %s932_s8 = scalar_select %p27_p1, %s797_s20, %s29_s6  }
  0x2c   : > { %p38_p8 = por %p37_p4, %p36_p2  ;;  %p1078_p10 = scmp.eq.s32.totalorder %s863_s22, 1 }
  0x2d   : > { %s198_s29 = sand.u32 1, %s797_s20   ;;  %s559_s10 = sshll.u32 %s801_s21, 7 }
  0x2e   : > { %p936_p12 = por %p1078_p10, %p36_p2  ;;  %s533_s11 = sshll.u32 %s198_s29, 3 }
  0x2f   : > { %s945_s14 = scalar_lea.hbm %s1065_s0, %s559_s10  ;;  %s202_s28 = scalar_lea.vmem [#allocation2], %s533_s11 }
  0x30   : > { %s209_s6 = sshll.u32 %s202_s28, 4  ;;  %p947_p11 = pnand %p618_p6, %p38_p8  ;;  %s951_s6 = int_to_ptr.vmem [resolvable:$true] %s209_s6 }
  0x31   : > { %s953_s15 = scalar_lea.sflag [#allocation3], %s198_s29  ;;  %s701_s23 = scalar_lea.hbm %s945_s14, 128 }
  0x32   : > { %p702_p13 = scmp.ne.s32.totalorder %s945_s14, %s701_s23  ;;  %p703_p0 = pneg %p947_p11 }
  0x33   : > { %s706_s11 = scalar_lea.hbm %s1065_s0, 256  ;;  %p707_p7 = scmp.lt.u32.totalorder %s945_s14, %s1065_s0 }
  0x34   : > { %p704_p3 = pnand %p703_p0, %p702_p13  ;;  %p708_p9 = scmp.lt.u32.totalorder %s706_s11, %s701_s23 }
  0x35   : > { %p710_p2 = scmp.lt.u32.totalorder %s701_s23, %s945_s14 }
  0x36   : > { %p705_p5 = pneg %p704_p3  ;;  %p709_p1 = por %p708_p9, %p707_p7 }
  0x38   : > { %p711_p4 = por %p710_p2, %p709_p1 }
  0x3a   : > { %p712_p6 = pnand %p711_p4, %p705_p5 }
  0x3c   : > { %715 = shalt.err (!%p712_p6)
}
  0x3d   : > { %s716_s29 = scalar_lea.vmem %s951_s6, 128  ;;  %s806_s28 = smov [#allocation2]  }
  0x3e   : > { %p717_p8 = scmp.ne.s32.totalorder %s951_s6, %s716_s29  ;;  %s721_s27 = sshll.u32 %s806_s28, 4  ;;  %s722_s27 = int_to_ptr.vmem [resolvable:$false] %s721_s27 }
  0x3f   : > { %s723_s10 = scalar_lea.vmem %s722_s27, 256  ;;  %p724_p3 = scmp.lt.s32.totalorder %s951_s6, %s722_s27 }
  0x40   : > { %p719_p10 = pnand %p717_p8, %p703_p0  ;;  %p725_p7 = scmp.lt.s32.totalorder %s723_s10, %s716_s29 }
  0x42   : > { %p720_p13 = pneg %p719_p10  ;;  %p726_p9 = por %p725_p7, %p724_p3 }
  0x44   : > { %p727_p1 = pnand %p726_p9, %p720_p13 }
  0x46   : > { %730 = shalt.err (!%p727_p1)
}
  0x47   : > { %612 = dma.hbm_to_vmem [thread:$0]  (!%p947_p11), %s945_s14, 128, %s951_s6, %s953_s15, %s804_s16, %s804_s16, %s805_s17  }
  0x48   : > { %p1081_p0 = scmp.ne.s32.totalorder %s1076_s26, 0 }
  0x49   : > { %s987_s23 = sand.u32 (!%p1081_p0), 1, %s793_s19   ;;  %p1082_p5 = scmp.ne.s32.totalorder (!%p1081_p0), %s1074_s24, 0 }
  0x4a   : > { %221 = sbr.rel (%p1081_p0) target bundleno = 664 (0x298), region = 40  ;;  %s537_s11 = sshll.u32 (!%p1081_p0), %s987_s23, 3 }
  0x4b   : > { %s224_s12 = scalar_lea.sflag (!%p1081_p0), [#allocation3], %s987_s23  ;;  %s993_s7 = scalar_lea.vmem (!%p1081_p0), [#allocation2], %s537_s11 }
  0x51   : > { %776 = dma.done.wait (%p1082_p5), %s224_s12, 128  }
  0x52   : > { %778 = vsyncadd (%p1082_p5), %s224_s12, 4294967168  ;;  %p1083_p11 = scmp.eq.s32.totalorder %s863_s22, 0 }
  0x54   : > { %780 = dma.done.wait (%p1083_p11), [#allocation6], 1024   ;;  %p1084_p2 = pmov %p1083_p11 }
  0x55   : > { %v807_v0 = vmov 0.0   ;;  %vm808_vm0 = vmmov 0   ;;  %v660_v1 = vld [vmem:[#allocation5] sm:$0xff]   ;;  %v661_v2 = vld [vmem:[#allocation5 + $0x8] sm:$0xff]   ;;  %v662_v3 = vld [vmem:[#allocation5 + $0x10] sm:$0xff]   ;;  %s562_s15 = sshll.u32 %s863_s22, 7 }
  0x56   : > { %782 = vsyncadd (%p1084_p2), [#allocation6], 4294966272  ;;  %577 = vmatprep.subr.bf16.mxu0 %v807_v0  ;;  %593 = vmatprep.mubr.msk.bf16.mxu0 %vm808_vm0, %v807_v0  ;;  %v663_v4 = vld [vmem:[#allocation5 + $0x18] sm:$0xff]   ;;  %v664_v5 = vld [vmem:[#allocation5 + $0x20] sm:$0xff]   ;;  %s257_s13 = scalar_lea.vmem [#allocation7], %s537_s11  ;;  %s1019_s10 = scalar_lea.hbm %s1070_s5, %s562_s15 }
  0x57   : > { %578 = vmatpush3.bf16.msra.mxu0 %v660_v1  ;;  %v665_v6 = vld [vmem:[#allocation5 + $0x28] sm:$0xff]   ;;  %v666_v7 = vld [vmem:[#allocation5 + $0x30] sm:$0xff]   ;;  %v667_v8 = vld [vmem:[#allocation5 + $0x38] sm:$0xff]   ;;  %s446_s29 = sshll.u32 %s257_s13, 4  ;;  %s433_s12 = scalar_lea.sflag [#allocation4], %s987_s23  ;;  %s1021_s29 = int_to_ptr.vmem [resolvable:$true] %s446_s29 }
  0x58   : > { %579 = vmatprep.subr.bf16.mxu0 %v807_v0  ;;  %v668_v9 = vld [vmem:[%s993_s7] sm:$0xff]   ;;  %s731_s7 = scalar_lea.vmem %s1021_s29, 128  ;;  %s809_s22 = smov [#allocation7]  }
  0x59   : > { %v540_v10 = vld [vmem:[%s1067_s2] ss:$0 sm:$0xff]  ;;  %p732_p4 = scmp.ne.s32.totalorder %s1021_s29, %s731_s7  ;;  %s735_s11 = sshll.u32 %s809_s22, 4  ;;  %s736_s11 = int_to_ptr.vmem [resolvable:$false] %s735_s11 }
  0x5a   : > { %v550_v33 = vld [vmem:[%s1068_s3] ss:$0 sm:$0xff]  ;;  %s737_s24 = scalar_lea.vmem %s736_s11, 256  ;;  %p738_p10 = scmp.lt.s32.totalorder %s1021_s29, %s736_s11 }
  0x5b   : > { %580 = vmatpush3.bf16.msra.mxu0 %v661_v2  ;;  %v551_v37 = vld [vmem:[%s1069_s4] ss:$0 sm:$0xff]  ;;  %p733_p6 = pnand %p732_p4, %p936_p12  ;;  %p739_p13 = scmp.lt.s32.totalorder %s737_s24, %s731_s7 }
  0x5c   : > { %581 = vmatprep.subr.bf16.mxu0 %v807_v0 }
  0x5d   : > { %p734_p8 = pneg %p733_p6  ;;  %p740_p3 = por %p739_p13, %p738_p10 }
  0x5f   : > { %582 = vmatpush3.bf16.msra.mxu0 %v662_v3  ;;  %p741_p7 = pnand %p740_p3, %p734_p8 }
  0x60   : > { %583 = vmatprep.subr.bf16.mxu0 %v807_v0 }
  0x63   : > { %584 = vmatpush3.bf16.msra.mxu0 %v663_v4 }
  0x64   : > { %585 = vmatprep.subr.bf16.mxu0 %v807_v0 }
  0x67   : > { %586 = vmatpush3.bf16.msra.mxu0 %v664_v5 }
  0x68   : > { %587 = vmatprep.subr.bf16.mxu0 %v807_v0 }
  0x6b   : > { %588 = vmatpush3.bf16.msra.mxu0 %v665_v6 }
  0x6c   : > { %589 = vmatprep.subr.bf16.mxu0 %v807_v0 }
  0x6f   : > { %590 = vmatpush3.bf16.msra.mxu0 %v666_v7 }
  0x70   : > { %591 = vmatprep.subr.bf16.mxu0 %v807_v0 }
  0x73   : > { %592 = vmatpush3.bf16.msra.mxu0 %v667_v8 }
  0x76   : > { %594 = vmatmul.mubr.bf16.vlgmr.msra.gmra.mrb[0].mxu0 %v668_v9 }
 0x149   : > { %v374_v11 = vpop.f32.mrb[0].mxu0 }
 0x14a   : > { %v375_v12 = vadd.f32 %v540_v10, %v374_v11  ;;  %v595_v13 = vpop.f32.mrb[1].mxu0 }
 0x14b   : > { %v377_v14 = vpop.f32.mrb[2].mxu0 }
 0x14c   : > { %381 = vadd.xlane.f32.xlu0 %v375_v12  ;;  %v596_v15 = vpop.f32.mrb[3].mxu0  ;;  %v378_v16 = vadd.f32 %v540_v10, %v377_v14 }
 0x150   : > { %383 = vadd.xlane.f32.xlu0 %v378_v16 }
 0x1d9   : > { %v382_v17 = vpop.xlane.xlu0 %381 }
 0x1da   : > { %v386_v18 = vmul.f32 0.0078125, %v382_v17 }
 0x1dc   : > { %v388_v19 = vsub.f32 %v375_v12, %v386_v18 }
 0x1dd   : > { %v384_v20 = vpop.xlane.xlu0 %383 }
 0x1de   : > { %v387_v21 = vmul.f32 0.0078125, %v384_v20  ;;  %v390_v22 = vmul.f32 %v388_v19, %v388_v19 }
 0x1e0   : > { %v389_v23 = vsub.f32 %v378_v16, %v387_v21  ;;  %392 = vadd.xlane.f32.xlu1 %v390_v22 }
 0x1e2   : > { %v391_v24 = vmul.f32 %v389_v23, %v389_v23 }
 0x1e4   : > { %394 = vadd.xlane.f32.xlu1 %v391_v24 }
 0x26d   : > { %v393_v25 = vpop.xlane.xlu1 %392 }
 0x26e   : > { %v396_v26 = vmul.f32 0.0078125, %v393_v25 }
 0x270   : > { %v398_v27 = vadd.f32 1e-05, %v396_v26 }
 0x271   : > { %v395_v28 = vpop.xlane.xlu1 %394 }
 0x272   : > { %669 = vrsqrt.f32 %v398_v27  ;;  %v397_v29 = vmul.f32 0.0078125, %v395_v28 }
 0x274   : > { %v399_v30 = vadd.f32 1e-05, %v397_v29 }
 0x276   : > { %671 = vrsqrt.f32 %v399_v30 }
 0x27c   : > { %v670_v31 = vpop.eup %669 }
 0x27d   : > { %v402_v32 = vmul.f32 %v670_v31, %v388_v19 }
 0x27f   : > { %v411_v35 = vmul.f32 %v550_v33, %v402_v32 }
 0x280   : > { %v672_v34 = vpop.eup %671 }
 0x281   : > { %v403_v36 = vmul.f32 %v672_v34, %v389_v23  ;;  %v420_v39 = vadd.f32 %v551_v37, %v411_v35 }
 0x283   : > { %v412_v38 = vmul.f32 %v550_v33, %v403_v36 }
 0x285   : > { %v421_v40 = vadd.f32 %v551_v37, %v412_v38 }
 0x287   : > { %v566_v41 = vpack.c.bf16 %v421_v40, %v420_v39 }
 0x289   : > { %567 = vst [vmem:[%s257_s13] sm:$0xff] %v566_v41  }
 0x28a   : > { %744 = shalt.err (!%p741_p7)
}
 0x28b   : > { %s745_s26 = scalar_lea.hbm %s1019_s10, 128  ;;  %s749_s14 = scalar_lea.hbm %s1070_s5, 256 }
 0x28c   : > { %p746_p9 = scmp.ne.s32.totalorder %s1019_s10, %s745_s26  ;;  %p750_p5 = scmp.lt.u32.totalorder %s1019_s10, %s1070_s5 }
 0x28d   : > { %p751_p11 = scmp.lt.u32.totalorder %s749_s14, %s745_s26  ;;  %p753_p4 = scmp.lt.u32.totalorder %s745_s26, %s1019_s10 }
 0x28e   : > { %p747_p1 = pnand %p746_p9, %p936_p12 }
 0x28f   : > { %p752_p2 = por %p751_p11, %p750_p5 }
 0x290   : > { %p748_p0 = pneg %p747_p1 }
 0x291   : > { %p754_p6 = por %p753_p4, %p752_p2 }
 0x293   : > { %p755_p8 = pnand %p754_p6, %p748_p0 }
 0x295   : > { %758 = shalt.err (!%p755_p8)
}
 0x296   : > { %s810_s13 = smov 64   ;;  %s811_s28 = smov 4  }
 0x297   : > { %603 = dma.vmem_to_hbm [thread:$0]  (%p936_p12), %s1021_s29, 128, %s1019_s10, %s433_s12, %s810_s13, %s810_s13, %s811_s28  }
 0x298 PF: > { %s461_s27 = sand.u32 1, %s789_s18   ;;  %p1085_p10 = scmp.ne.s32.totalorder %s1075_s25, 0 }
 0x299   : > { %p1086_p13 = scmp.ge.s32.totalorder %s801_s21, 2  ;;  %s462_s7 = scalar_lea.sflag [#allocation4], %s461_s27 }
 0x29b   : > { %p614_p3 = pnand %p1086_p13, %p1085_p10 }
 0x29d   : > { %784 = dma.done.wait (!%p614_p3), %s462_s7, 128  }
 0x29e   : > { %786 = vsyncadd (!%p614_p3), %s462_s7, 4294967168  ;;  %p19_p7 = scmp.ge.s32.totalorder %s898_s30, 4   ;;  %s1087_s18 = smov %s793_s19 }
 0x29f   : > { %s1088_s19 = smov %s797_s20  ;;  %s1089_s20 = smov %s932_s8 }
 0x2a0   : > { %s1090_s21 = smov %s898_s30  ;;  %21 = sbr.rel (!%p19_p7) target bundleno = 6 (0x6), region = 89 }
 0x2a7   :  { %467 = vsyncpa [#allocation3], 1 }
 0x2a8   :  { %469 = vsyncpa [#allocation3 + $0x1], 1 }
 0x2a9   :  { %470 = vsyncpa [#allocation6], 1 }
 0x2aa   :  { %471 = vsyncpa [#allocation4], 1 }
 0x2ab   :  { %473 = vsyncpa [#allocation4 + $0x1], 1 }

</bundles_post_ra>
